<compile_context>
chip_gen: v5e
topology: v5e:2x2
jax: 0.10.0
libtpu: 0.0.40
codegen_flags: <defaults>
</compile_context>

<pallas_src>
import functools
import numpy as np
import jax
import jax.numpy as jnp
from jax.experimental import pallas as pl
from jax.experimental.pallas import tpu as pltpu

# ----------------------------- model hyperparams -----------------------------
B = 2        # batch
S = 8        # sequence length
D = 32       # model size (EncoderLayer.size)
H = 4        # attention heads
DK = D // H  # per-head dim
DFF = 64     # feed-forward hidden size
EPS = 1e-6
NEG_INF = -1e9


def _layer_norm(x, gamma, beta):
    # Annotated-Transformer LayerNorm: unbiased std, eps added to std.
    mean = jnp.mean(x, axis=-1, keepdims=True)
    var = jnp.sum((x - mean) ** 2, axis=-1, keepdims=True) / (x.shape[-1] - 1)
    std = jnp.sqrt(var)
    return gamma * (x - mean) / (std + EPS) + beta


# ---------------------------------- kernel -----------------------------------
def encoder_layer_kernel(
    x_ref, bias_ref, vec_ref, wqkv_ref, wo_ref, w1_ref, w2_ref, out_ref, *, heads
):
    bb, Sn, Dn = x_ref.shape
    DKn = Dn // heads
    DFFn = w1_ref.shape[1]
    N = bb * Sn                               # fused batch-block sequence length

    x = x_ref[...].reshape(N, Dn)             # whole batch-block as one slab
    vec = vec_ref[...]                        # (8, 128) packed small params
    ln1_g, ln1_b = vec[0:1, :Dn], vec[1:2, :Dn]
    ln2_g, ln2_b = vec[2:3, :Dn], vec[3:4, :Dn]
    bqkv = vec[4:5, :3 * Dn]
    bo = vec[5:6, :Dn]
    b1 = vec[6:7, :DFFn]
    b2 = vec[7:8, :Dn]

    # ---------------- sublayer 0: pre-LN self-attention + residual ----------
    xn = _layer_norm(x, ln1_g, ln1_b)
    # Fused QKV projection; softmax scale is pre-folded into the Q columns.
    qkv = jnp.dot(xn, wqkv_ref[...], preferred_element_type=jnp.float32) + bqkv

    bias = bias_ref[0]                        # (N, N) block-diag additive mask
    ctx_cols = []
    for h in range(heads):                    # static unroll; plain lane slices
        lo = h * DKn
        qh = qkv[:, lo:lo + DKn]
        kh = qkv[:, Dn + lo:Dn + lo + DKn]
        vh = qkv[:, 2 * Dn + lo:2 * Dn + lo + DKn]
        s = jnp.einsum("qd,kd->qk", qh, kh,
                       preferred_element_type=jnp.float32) + bias
        s = s - jnp.max(s, axis=-1, keepdims=True)
        p = jnp.exp(s)
        p = p / jnp.sum(p, axis=-1, keepdims=True)
        ctx_cols.append(jnp.dot(p, vh, preferred_element_type=jnp.float32))
    ctx = jnp.concatenate(ctx_cols, axis=-1)  # (N, D), head-concat column order
    # Single fused output projection (no per-head accumulate loop).
    attn = jnp.dot(ctx, wo_ref[...], preferred_element_type=jnp.float32) + bo
    x1 = x + attn                             # dropout is identity in eval mode

    # ---------------- sublayer 1: pre-LN feed-forward + residual -------------
    xn2 = _layer_norm(x1, ln2_g, ln2_b)
    h1 = jnp.maximum(
        jnp.dot(xn2, w1_ref[...], preferred_element_type=jnp.float32) + b1, 0.0)
    ff = jnp.dot(h1, w2_ref[...], preferred_element_type=jnp.float32) + b2

    out_ref[...] = (x1 + ff).reshape(bb, Sn, Dn)


# ------------------------- one-time parameter packing ------------------------
def pack_params(params, *, heads=H):
    """Fold + pack parameters ONCE at init (hoisted off the per-call path)."""
    Dn = params["wq"].shape[0]
    DFFn = params["w1"].shape[1]
    # Correctness guard for the (8,128) vec packing (review concern).
    assert 3 * Dn <= 128 and DFFn <= 128, (
        "vec packing assumes 3*D <= 128 and DFF <= 128; widen vec for larger models")

    scale = 1.0 / np.sqrt(Dn // heads)        # fold softmax scale into Q
    wqkv = jnp.concatenate(
        [params["wq"] * scale, params["wk"], params["wv"]], axis=1)
    bqkv = jnp.concatenate(
        [params["bq"] * scale, params["bk"], params["bv"]], axis=1)

    def _row(v, width=128):
        v = jnp.asarray(v, jnp.float32).reshape(1, -1)
        return jnp.pad(v, ((0, 0), (0, width - v.shape[1])))

    vec = jnp.concatenate(
        [_row(params["ln1_g"]), _row(params["ln1_b"]),
         _row(params["ln2_g"]), _row(params["ln2_b"]),
         _row(bqkv), _row(params["bo"]),
         _row(params["b1"]), _row(params["b2"])], axis=0)       # (8, 128)

    return {"vec": vec, "wqkv": wqkv, "wo": params["wo"],
            "w1": params["w1"], "w2": params["w2"]}


# --------------------------------- wrapper -----------------------------------
def encoder_layer(x, mask, mask_bi, packed, *, heads=H, batch_block=None):
    """x: (B,S,D) f32; mask, mask_bi: (B,S,S) f32 in {0,1}; packed: pack_params()."""
    Bn, Sn, Dn = x.shape

    if batch_block is None:
        # Whole batch in one grid step: at B=2 the per-core work is far below
        # the ~0.35us per-step overhead, so splitting across grid steps / v7x
        # TensorCores is pure overhead.  For large B pass batch_block (e.g.
        # B//2) to shard across cores.
        batch_block = Bn
    if Bn % batch_block != 0:
        batch_block = 1
    bb = batch_block
    G = Bn // bb
    Nn = bb * Sn

    # Input-dependent (stays per-call): combine the two multiplicative masks
    # into one additive bias, laid out block-diagonally over the bb batch
    # elements sharing a grid step.  Cross-batch entries use 2*NEG_INF so they
    # vanish even for fully-masked query rows -> exact match to the reference.
    keep = (mask * mask_bi) > 0.0
    bias = jnp.where(keep, 0.0, NEG_INF).astype(jnp.float32)
    bias = bias.reshape(G, bb, Sn, Sn)
    eye = jnp.eye(bb, dtype=jnp.float32)
    bias = jnp.where(eye[None, :, None, :, None] > 0.0,
                     bias[:, :, :, None, :],
                     2.0 * NEG_INF).reshape(G, Nn, Nn)           # (G, N, N)

    vec, wqkv = packed["vec"], packed["wqkv"]
    wo, w1, w2 = packed["wo"], packed["w1"], packed["w2"]

    full = lambda a: pl.BlockSpec(a.shape, lambda i, _n=a.ndim: (0,) * _n)

    out = pl.pallas_call(
        functools.partial(encoder_layer_kernel, heads=heads),
        out_shape=jax.ShapeDtypeStruct((Bn, Sn, Dn), jnp.float32),
        grid_spec=pltpu.PrefetchScalarGridSpec(
            num_scalar_prefetch=0,
            grid=(G,),
            in_specs=[
                pl.BlockSpec((bb, Sn, Dn), lambda i: (i, 0, 0)),   # x
                pl.BlockSpec((1, Nn, Nn), lambda i: (i, 0, 0)),    # additive bias
                full(vec),              # packed LN params + all biases (8,128)
                full(wqkv),             # fused, pre-scaled QKV weight (D, 3D)
                full(wo),
                full(w1),
                full(w2),
            ],
            out_specs=pl.BlockSpec((bb, Sn, Dn), lambda i: (i, 0, 0)),
        ),
        compiler_params=pltpu.CompilerParams(
            dimension_semantics=("parallel",)),
    )(x, bias, vec, wqkv, wo, w1, w2)
    return out


# ---------------------------- pure-JAX reference -----------------------------
def encoder_layer_ref(x, mask, mask_bi, p):
    Bn, Sn, Dn = x.shape
    keep = (mask * mask_bi) > 0.0                       # (B,S,S)
    xn = _layer_norm(x, p["ln1_g"][0], p["ln1_b"][0])
    q = xn @ p["wq"] + p["bq"][0]
    k = xn @ p["wk"] + p["bk"][0]
    v = xn @ p["wv"] + p["bv"][0]
    qh = q.reshape(Bn, Sn, H, DK).transpose(0, 2, 1, 3)
    kh = k.reshape(Bn, Sn, H, DK).transpose(0, 2, 1, 3)
    vh = v.reshape(Bn, Sn, H, DK).transpose(0, 2, 1, 3)
    scores = jnp.einsum("bhqd,bhkd->bhqk", qh, kh) / np.sqrt(DK)
    scores = jnp.where(keep[:, None, :, :], scores, NEG_INF)
    attn = jax.nn.softmax(scores, axis=-1)
    ctx = jnp.einsum("bhqk,bhkd->bhqd", attn, vh).transpose(0, 2, 1, 3).reshape(Bn, Sn, Dn)
    x1 = x + (ctx @ p["wo"] + p["bo"][0])
    xn2 = _layer_norm(x1, p["ln2_g"][0], p["ln2_b"][0])
    ff = jnp.maximum(xn2 @ p["w1"] + p["b1"][0], 0.0) @ p["w2"] + p["b2"][0]
    return x1 + ff


# ----------------------------------- main ------------------------------------
if __name__ == "__main__":
    key = jax.random.PRNGKey(0)
    ks = jax.random.split(key, 16)

    def w(k, shape, scale=0.05):
        return (scale * jax.random.normal(k, shape)).astype(jnp.float32)

    params = {
        "ln1_g": jnp.ones((1, D), jnp.float32),
        "ln1_b": jnp.zeros((1, D), jnp.float32),
        "wq": w(ks[0], (D, D)), "bq": w(ks[1], (1, D)),
        "wk": w(ks[2], (D, D)), "bk": w(ks[3], (1, D)),
        "wv": w(ks[4], (D, D)), "bv": w(ks[5], (1, D)),
        "wo": w(ks[6], (D, D)), "bo": w(ks[7], (1, D)),
        "ln2_g": jnp.ones((1, D), jnp.float32),
        "ln2_b": jnp.zeros((1, D), jnp.float32),
        "w1": w(ks[8], (D, DFF)), "b1": w(ks[9], (1, DFF)),
        "w2": w(ks[10], (DFF, D)), "b2": w(ks[11], (1, D)),
    }

    x = jax.random.normal(ks[12], (B, S, D), jnp.float32)
    # padding-style mask: last 2 positions of batch 1 are padded
    lens = jnp.array([S, S - 2])
    valid = (jnp.arange(S)[None, :] < lens[:, None]).astype(jnp.float32)      # (B,S)
    mask = valid[:, None, :] * jnp.ones((B, S, 1), jnp.float32)               # (B,S,S)
    # directional (forward/causal) mask
    mask_bi = jnp.broadcast_to(
        jnp.tril(jnp.ones((S, S), jnp.float32)), (B, S, S)).astype(jnp.float32)

    packed = pack_params(params)                 # one-time packing (init path)
    run = jax.jit(encoder_layer)                 # per-call path: fused under jit

    out = jax.block_until_ready(run(x, mask, mask_bi, packed))
    ref = jax.block_until_ready(encoder_layer_ref(x, mask, mask_bi, params))

    assert out.shape == (B, S, D)
    np.testing.assert_allclose(np.asarray(out), np.asarray(ref), rtol=1e-4, atol=1e-4)
    print("KERNEL_OK")
</pallas_src>

<mosaic_0001>
module attributes {stable_mosaic.version = 11 : i64} {
  func.func @encoder_layer_kernel(%arg0: i32, %arg1: memref<2x8x32xf32, #tpu.memory_space<vmem>>, %arg2: memref<1x16x16xf32, #tpu.memory_space<vmem>>, %arg3: memref<8x128xf32, #tpu.memory_space<vmem>>, %arg4: memref<32x96xf32, #tpu.memory_space<vmem>>, %arg5: memref<32x32xf32, #tpu.memory_space<vmem>>, %arg6: memref<32x64xf32, #tpu.memory_space<vmem>>, %arg7: memref<64x32xf32, #tpu.memory_space<vmem>>, %arg8: memref<2x8x32xf32, #tpu.memory_space<vmem>>) attributes {dimension_semantics = [#tpu.dimension_semantics<parallel>], iteration_bounds = array<i64: 1>, scalar_prefetch = 0 : i64, scratch_operands = 0 : i64, tpu.core_type = #tpu.core_type<tc>, window_params = [{transform_indices = @transform_0, window_bounds = array<i64: 2, 8, 32>}, {transform_indices = @transform_1, window_bounds = array<i64: 1, 16, 16>}, {pipeline_mode = #tpu.pipeline_mode<synchronous>, transform_indices = @transform_2, window_bounds = array<i64: 8, 128>}, {pipeline_mode = #tpu.pipeline_mode<synchronous>, transform_indices = @transform_3, window_bounds = array<i64: 32, 96>}, {pipeline_mode = #tpu.pipeline_mode<synchronous>, transform_indices = @transform_4, window_bounds = array<i64: 32, 32>}, {pipeline_mode = #tpu.pipeline_mode<synchronous>, transform_indices = @transform_5, window_bounds = array<i64: 32, 64>}, {pipeline_mode = #tpu.pipeline_mode<synchronous>, transform_indices = @transform_6, window_bounds = array<i64: 64, 32>}, {transform_indices = @transform_7, window_bounds = array<i64: 2, 8, 32>}]} {
    %c0 = arith.constant 0 : index
    %c0_0 = arith.constant 0 : index
    %c0_1 = arith.constant 0 : index
    %0 = vector.load %arg1[%c0, %c0_0, %c0_1] : memref<2x8x32xf32, #tpu.memory_space<vmem>>, vector<2x8x32xf32>
    %1 = vector.shape_cast %0 : vector<2x8x32xf32> to vector<16x32xf32>
    %c0_2 = arith.constant 0 : index
    %c0_3 = arith.constant 0 : index
    %2 = vector.load %arg3[%c0_2, %c0_3] : memref<8x128xf32, #tpu.memory_space<vmem>>, vector<8x128xf32>
    %3 = vector.extract_strided_slice %2 {offsets = [0, 0], sizes = [1, 32], strides = [1, 1]} : vector<8x128xf32> to vector<1x32xf32>
    %4 = vector.extract_strided_slice %2 {offsets = [1, 0], sizes = [1, 32], strides = [1, 1]} : vector<8x128xf32> to vector<1x32xf32>
    %5 = vector.extract_strided_slice %2 {offsets = [2, 0], sizes = [1, 32], strides = [1, 1]} : vector<8x128xf32> to vector<1x32xf32>
    %6 = vector.extract_strided_slice %2 {offsets = [3, 0], sizes = [1, 32], strides = [1, 1]} : vector<8x128xf32> to vector<1x32xf32>
    %7 = vector.extract_strided_slice %2 {offsets = [4, 0], sizes = [1, 96], strides = [1, 1]} : vector<8x128xf32> to vector<1x96xf32>
    %8 = vector.extract_strided_slice %2 {offsets = [5, 0], sizes = [1, 32], strides = [1, 1]} : vector<8x128xf32> to vector<1x32xf32>
    %9 = vector.extract_strided_slice %2 {offsets = [6, 0], sizes = [1, 64], strides = [1, 1]} : vector<8x128xf32> to vector<1x64xf32>
    %10 = vector.extract_strided_slice %2 {offsets = [7, 0], sizes = [1, 32], strides = [1, 1]} : vector<8x128xf32> to vector<1x32xf32>
    %cst = arith.constant dense<0.000000e+00> : vector<16xf32>
    %11 = vector.multi_reduction <add>, %1, %cst [1] : vector<16x32xf32> to vector<16xf32>
    %12 = vector.shape_cast %11 : vector<16xf32> to vector<16x1xf32>
    %cst_4 = arith.constant 3.200000e+01 : f32
    %13 = vector.broadcast %cst_4 : f32 to vector<16x1xf32>
    %14 = arith.divf %12, %13 : vector<16x1xf32>
    %15 = vector.broadcast %14 : vector<16x1xf32> to vector<16x32xf32>
    %16 = arith.subf %1, %15 : vector<16x32xf32>
    %17 = arith.mulf %16, %16 : vector<16x32xf32>
    %cst_5 = arith.constant dense<0.000000e+00> : vector<16xf32>
    %18 = vector.multi_reduction <add>, %17, %cst_5 [1] : vector<16x32xf32> to vector<16xf32>
    %19 = vector.shape_cast %18 : vector<16xf32> to vector<16x1xf32>
    %cst_6 = arith.constant 3.100000e+01 : f32
    %20 = vector.broadcast %cst_6 : f32 to vector<16x1xf32>
    %21 = arith.divf %19, %20 : vector<16x1xf32>
    %22 = math.sqrt %21 : vector<16x1xf32>
    %23 = vector.broadcast %14 : vector<16x1xf32> to vector<16x32xf32>
    %24 = arith.subf %1, %23 : vector<16x32xf32>
    %25 = vector.broadcast %3 : vector<1x32xf32> to vector<16x32xf32>
    %26 = arith.mulf %25, %24 : vector<16x32xf32>
    %cst_7 = arith.constant 9.99999997E-7 : f32
    %27 = vector.broadcast %cst_7 : f32 to vector<16x1xf32>
    %28 = arith.addf %22, %27 : vector<16x1xf32>
    %29 = vector.broadcast %28 : vector<16x1xf32> to vector<16x32xf32>
    %30 = arith.divf %26, %29 : vector<16x32xf32>
    %31 = vector.broadcast %4 : vector<1x32xf32> to vector<16x32xf32>
    %32 = arith.addf %30, %31 : vector<16x32xf32>
    %c0_8 = arith.constant 0 : index
    %c0_9 = arith.constant 0 : index
    %33 = vector.load %arg4[%c0_8, %c0_9] : memref<32x96xf32, #tpu.memory_space<vmem>>, vector<32x96xf32>
    %cst_10 = arith.constant dense<0.000000e+00> : vector<16x96xf32>
    %34 = tpu.matmul %32, %33, %cst_10 {dimension_numbers = #tpu.dot_dimension_numbers<[1], [0], [0], [1], [0, 0, 1, 1], [], []>} : vector<16x32xf32>, vector<32x96xf32>, vector<16x96xf32> -> vector<16x96xf32>
    %35 = vector.broadcast %7 : vector<1x96xf32> to vector<16x96xf32>
    %36 = arith.addf %34, %35 : vector<16x96xf32>
    %c0_11 = arith.constant 0 : index
    %c0_12 = arith.constant 0 : index
    %c0_13 = arith.constant 0 : index
    %37 = vector.load %arg2[%c0_11, %c0_12, %c0_13] : memref<1x16x16xf32, #tpu.memory_space<vmem>>, vector<1x16x16xf32>
    %38 = vector.shape_cast %37 : vector<1x16x16xf32> to vector<16x16xf32>
    %39 = vector.extract_strided_slice %36 {offsets = [0, 0], sizes = [16, 8], strides = [1, 1]} : vector<16x96xf32> to vector<16x8xf32>
    %40 = vector.extract_strided_slice %36 {offsets = [0, 32], sizes = [16, 8], strides = [1, 1]} : vector<16x96xf32> to vector<16x8xf32>
    %41 = vector.extract_strided_slice %36 {offsets = [0, 64], sizes = [16, 8], strides = [1, 1]} : vector<16x96xf32> to vector<16x8xf32>
    "tpu.trace_start"() <{level = 10 : i32, message = "qd,kd->qk"}> : () -> ()
    %cst_14 = arith.constant dense<0.000000e+00> : vector<16x16xf32>
    %42 = tpu.matmul %39, %40, %cst_14 {dimension_numbers = #tpu.dot_dimension_numbers<[1], [1], [0], [0], [0, 0, 1, 0], [], []>} : vector<16x8xf32>, vector<16x8xf32>, vector<16x16xf32> -> vector<16x16xf32>
    "tpu.trace_stop"() : () -> ()
    %43 = arith.addf %42, %38 : vector<16x16xf32>
    %cst_15 = arith.constant dense<0xFF800000> : vector<16xf32>
    %44 = vector.multi_reduction <maximumf>, %43, %cst_15 [1] : vector<16x16xf32> to vector<16xf32>
    %45 = vector.shape_cast %44 : vector<16xf32> to vector<16x1xf32>
    %46 = vector.broadcast %45 : vector<16x1xf32> to vector<16x16xf32>
    %47 = arith.subf %43, %46 : vector<16x16xf32>
    %48 = math.exp %47 : vector<16x16xf32>
    %cst_16 = arith.constant dense<0.000000e+00> : vector<16xf32>
    %49 = vector.multi_reduction <add>, %48, %cst_16 [1] : vector<16x16xf32> to vector<16xf32>
    %50 = vector.shape_cast %49 : vector<16xf32> to vector<16x1xf32>
    %51 = vector.broadcast %50 : vector<16x1xf32> to vector<16x16xf32>
    %52 = arith.divf %48, %51 : vector<16x16xf32>
    %cst_17 = arith.constant dense<0.000000e+00> : vector<16x8xf32>
    %53 = tpu.matmul %52, %41, %cst_17 {dimension_numbers = #tpu.dot_dimension_numbers<[1], [0], [0], [1], [0, 0, 1, 1], [], []>} : vector<16x16xf32>, vector<16x8xf32>, vector<16x8xf32> -> vector<16x8xf32>
    %54 = vector.extract_strided_slice %36 {offsets = [0, 8], sizes = [16, 8], strides = [1, 1]} : vector<16x96xf32> to vector<16x8xf32>
    %55 = vector.extract_strided_slice %36 {offsets = [0, 40], sizes = [16, 8], strides = [1, 1]} : vector<16x96xf32> to vector<16x8xf32>
    %56 = vector.extract_strided_slice %36 {offsets = [0, 72], sizes = [16, 8], strides = [1, 1]} : vector<16x96xf32> to vector<16x8xf32>
    "tpu.trace_start"() <{level = 10 : i32, message = "qd,kd->qk"}> : () -> ()
    %cst_18 = arith.constant dense<0.000000e+00> : vector<16x16xf32>
    %57 = tpu.matmul %54, %55, %cst_18 {dimension_numbers = #tpu.dot_dimension_numbers<[1], [1], [0], [0], [0, 0, 1, 0], [], []>} : vector<16x8xf32>, vector<16x8xf32>, vector<16x16xf32> -> vector<16x16xf32>
    "tpu.trace_stop"() : () -> ()
    %58 = arith.addf %57, %38 : vector<16x16xf32>
    %cst_19 = arith.constant dense<0xFF800000> : vector<16xf32>
    %59 = vector.multi_reduction <maximumf>, %58, %cst_19 [1] : vector<16x16xf32> to vector<16xf32>
    %60 = vector.shape_cast %59 : vector<16xf32> to vector<16x1xf32>
    %61 = vector.broadcast %60 : vector<16x1xf32> to vector<16x16xf32>
    %62 = arith.subf %58, %61 : vector<16x16xf32>
    %63 = math.exp %62 : vector<16x16xf32>
    %cst_20 = arith.constant dense<0.000000e+00> : vector<16xf32>
    %64 = vector.multi_reduction <add>, %63, %cst_20 [1] : vector<16x16xf32> to vector<16xf32>
    %65 = vector.shape_cast %64 : vector<16xf32> to vector<16x1xf32>
    %66 = vector.broadcast %65 : vector<16x1xf32> to vector<16x16xf32>
    %67 = arith.divf %63, %66 : vector<16x16xf32>
    %cst_21 = arith.constant dense<0.000000e+00> : vector<16x8xf32>
    %68 = tpu.matmul %67, %56, %cst_21 {dimension_numbers = #tpu.dot_dimension_numbers<[1], [0], [0], [1], [0, 0, 1, 1], [], []>} : vector<16x16xf32>, vector<16x8xf32>, vector<16x8xf32> -> vector<16x8xf32>
    %69 = vector.extract_strided_slice %36 {offsets = [0, 16], sizes = [16, 8], strides = [1, 1]} : vector<16x96xf32> to vector<16x8xf32>
    %70 = vector.extract_strided_slice %36 {offsets = [0, 48], sizes = [16, 8], strides = [1, 1]} : vector<16x96xf32> to vector<16x8xf32>
    %71 = vector.extract_strided_slice %36 {offsets = [0, 80], sizes = [16, 8], strides = [1, 1]} : vector<16x96xf32> to vector<16x8xf32>
    "tpu.trace_start"() <{level = 10 : i32, message = "qd,kd->qk"}> : () -> ()
    %cst_22 = arith.constant dense<0.000000e+00> : vector<16x16xf32>
    %72 = tpu.matmul %69, %70, %cst_22 {dimension_numbers = #tpu.dot_dimension_numbers<[1], [1], [0], [0], [0, 0, 1, 0], [], []>} : vector<16x8xf32>, vector<16x8xf32>, vector<16x16xf32> -> vector<16x16xf32>
    "tpu.trace_stop"() : () -> ()
    %73 = arith.addf %72, %38 : vector<16x16xf32>
    %cst_23 = arith.constant dense<0xFF800000> : vector<16xf32>
    %74 = vector.multi_reduction <maximumf>, %73, %cst_23 [1] : vector<16x16xf32> to vector<16xf32>
    %75 = vector.shape_cast %74 : vector<16xf32> to vector<16x1xf32>
    %76 = vector.broadcast %75 : vector<16x1xf32> to vector<16x16xf32>
    %77 = arith.subf %73, %76 : vector<16x16xf32>
    %78 = math.exp %77 : vector<16x16xf32>
    %cst_24 = arith.constant dense<0.000000e+00> : vector<16xf32>
    %79 = vector.multi_reduction <add>, %78, %cst_24 [1] : vector<16x16xf32> to vector<16xf32>
    %80 = vector.shape_cast %79 : vector<16xf32> to vector<16x1xf32>
    %81 = vector.broadcast %80 : vector<16x1xf32> to vector<16x16xf32>
    %82 = arith.divf %78, %81 : vector<16x16xf32>
    %cst_25 = arith.constant dense<0.000000e+00> : vector<16x8xf32>
    %83 = tpu.matmul %82, %71, %cst_25 {dimension_numbers = #tpu.dot_dimension_numbers<[1], [0], [0], [1], [0, 0, 1, 1], [], []>} : vector<16x16xf32>, vector<16x8xf32>, vector<16x8xf32> -> vector<16x8xf32>
    %84 = vector.extract_strided_slice %36 {offsets = [0, 24], sizes = [16, 8], strides = [1, 1]} : vector<16x96xf32> to vector<16x8xf32>
    %85 = vector.extract_strided_slice %36 {offsets = [0, 56], sizes = [16, 8], strides = [1, 1]} : vector<16x96xf32> to vector<16x8xf32>
    %86 = vector.extract_strided_slice %36 {offsets = [0, 88], sizes = [16, 8], strides = [1, 1]} : vector<16x96xf32> to vector<16x8xf32>
    "tpu.trace_start"() <{level = 10 : i32, message = "qd,kd->qk"}> : () -> ()
    %cst_26 = arith.constant dense<0.000000e+00> : vector<16x16xf32>
    %87 = tpu.matmul %84, %85, %cst_26 {dimension_numbers = #tpu.dot_dimension_numbers<[1], [1], [0], [0], [0, 0, 1, 0], [], []>} : vector<16x8xf32>, vector<16x8xf32>, vector<16x16xf32> -> vector<16x16xf32>
    "tpu.trace_stop"() : () -> ()
    %88 = arith.addf %87, %38 : vector<16x16xf32>
    %cst_27 = arith.constant dense<0xFF800000> : vector<16xf32>
    %89 = vector.multi_reduction <maximumf>, %88, %cst_27 [1] : vector<16x16xf32> to vector<16xf32>
    %90 = vector.shape_cast %89 : vector<16xf32> to vector<16x1xf32>
    %91 = vector.broadcast %90 : vector<16x1xf32> to vector<16x16xf32>
    %92 = arith.subf %88, %91 : vector<16x16xf32>
    %93 = math.exp %92 : vector<16x16xf32>
    %cst_28 = arith.constant dense<0.000000e+00> : vector<16xf32>
    %94 = vector.multi_reduction <add>, %93, %cst_28 [1] : vector<16x16xf32> to vector<16xf32>
    %95 = vector.shape_cast %94 : vector<16xf32> to vector<16x1xf32>
    %96 = vector.broadcast %95 : vector<16x1xf32> to vector<16x16xf32>
    %97 = arith.divf %93, %96 : vector<16x16xf32>
    %cst_29 = arith.constant dense<0.000000e+00> : vector<16x8xf32>
    %98 = tpu.matmul %97, %86, %cst_29 {dimension_numbers = #tpu.dot_dimension_numbers<[1], [0], [0], [1], [0, 0, 1, 1], [], []>} : vector<16x16xf32>, vector<16x8xf32>, vector<16x8xf32> -> vector<16x8xf32>
    %99 = tpu.concatenate %53, %68, %83, %98 in 1 : vector<16x8xf32>, vector<16x8xf32>, vector<16x8xf32>, vector<16x8xf32> -> vector<16x32xf32>
    %c0_30 = arith.constant 0 : index
    %c0_31 = arith.constant 0 : index
    %100 = vector.load %arg5[%c0_30, %c0_31] : memref<32x32xf32, #tpu.memory_space<vmem>>, vector<32x32xf32>
    %cst_32 = arith.constant dense<0.000000e+00> : vector<16x32xf32>
    %101 = tpu.matmul %99, %100, %cst_32 {dimension_numbers = #tpu.dot_dimension_numbers<[1], [0], [0], [1], [0, 0, 1, 1], [], []>} : vector<16x32xf32>, vector<32x32xf32>, vector<16x32xf32> -> vector<16x32xf32>
    %102 = vector.broadcast %8 : vector<1x32xf32> to vector<16x32xf32>
    %103 = arith.addf %101, %102 : vector<16x32xf32>
    %104 = arith.addf %1, %103 : vector<16x32xf32>
    %cst_33 = arith.constant dense<0.000000e+00> : vector<16xf32>
    %105 = vector.multi_reduction <add>, %104, %cst_33 [1] : vector<16x32xf32> to vector<16xf32>
    %106 = vector.shape_cast %105 : vector<16xf32> to vector<16x1xf32>
    %cst_34 = arith.constant 3.200000e+01 : f32
    %107 = vector.broadcast %cst_34 : f32 to vector<16x1xf32>
    %108 = arith.divf %106, %107 : vector<16x1xf32>
    %109 = vector.broadcast %108 : vector<16x1xf32> to vector<16x32xf32>
    %110 = arith.subf %104, %109 : vector<16x32xf32>
    %111 = arith.mulf %110, %110 : vector<16x32xf32>
    %cst_35 = arith.constant dense<0.000000e+00> : vector<16xf32>
    %112 = vector.multi_reduction <add>, %111, %cst_35 [1] : vector<16x32xf32> to vector<16xf32>
    %113 = vector.shape_cast %112 : vector<16xf32> to vector<16x1xf32>
    %cst_36 = arith.constant 3.100000e+01 : f32
    %114 = vector.broadcast %cst_36 : f32 to vector<16x1xf32>
    %115 = arith.divf %113, %114 : vector<16x1xf32>
    %116 = math.sqrt %115 : vector<16x1xf32>
    %117 = vector.broadcast %108 : vector<16x1xf32> to vector<16x32xf32>
    %118 = arith.subf %104, %117 : vector<16x32xf32>
    %119 = vector.broadcast %5 : vector<1x32xf32> to vector<16x32xf32>
    %120 = arith.mulf %119, %118 : vector<16x32xf32>
    %cst_37 = arith.constant 9.99999997E-7 : f32
    %121 = vector.broadcast %cst_37 : f32 to vector<16x1xf32>
    %122 = arith.addf %116, %121 : vector<16x1xf32>
    %123 = vector.broadcast %122 : vector<16x1xf32> to vector<16x32xf32>
    %124 = arith.divf %120, %123 : vector<16x32xf32>
    %125 = vector.broadcast %6 : vector<1x32xf32> to vector<16x32xf32>
    %126 = arith.addf %124, %125 : vector<16x32xf32>
    %c0_38 = arith.constant 0 : index
    %c0_39 = arith.constant 0 : index
    %127 = vector.load %arg6[%c0_38, %c0_39] : memref<32x64xf32, #tpu.memory_space<vmem>>, vector<32x64xf32>
    %cst_40 = arith.constant dense<0.000000e+00> : vector<16x64xf32>
    %128 = tpu.matmul %126, %127, %cst_40 {dimension_numbers = #tpu.dot_dimension_numbers<[1], [0], [0], [1], [0, 0, 1, 1], [], []>} : vector<16x32xf32>, vector<32x64xf32>, vector<16x64xf32> -> vector<16x64xf32>
    %129 = vector.broadcast %9 : vector<1x64xf32> to vector<16x64xf32>
    %130 = arith.addf %128, %129 : vector<16x64xf32>
    %cst_41 = arith.constant 0.000000e+00 : f32
    %131 = vector.broadcast %cst_41 : f32 to vector<16x64xf32>
    %132 = arith.maximumf %130, %131 : vector<16x64xf32>
    %c0_42 = arith.constant 0 : index
    %c0_43 = arith.constant 0 : index
    %133 = vector.load %arg7[%c0_42, %c0_43] : memref<64x32xf32, #tpu.memory_space<vmem>>, vector<64x32xf32>
    %cst_44 = arith.constant dense<0.000000e+00> : vector<16x32xf32>
    %134 = tpu.matmul %132, %133, %cst_44 {dimension_numbers = #tpu.dot_dimension_numbers<[1], [0], [0], [1], [0, 0, 1, 1], [], []>} : vector<16x64xf32>, vector<64x32xf32>, vector<16x32xf32> -> vector<16x32xf32>
    %135 = vector.broadcast %10 : vector<1x32xf32> to vector<16x32xf32>
    %136 = arith.addf %134, %135 : vector<16x32xf32>
    %137 = arith.addf %104, %136 : vector<16x32xf32>
    %138 = vector.shape_cast %137 : vector<16x32xf32> to vector<2x8x32xf32>
    %c0_45 = arith.constant 0 : index
    %c0_46 = arith.constant 0 : index
    %c0_47 = arith.constant 0 : index
    %139 = vector.load %arg8[%c0_45, %c0_46, %c0_47] : memref<2x8x32xf32, #tpu.memory_space<vmem>>, vector<2x8x32xf32>
    tpu.vector_store %arg8[%c0_45, %c0_46, %c0_47], %138 {strides = array<i32>} : memref<2x8x32xf32, #tpu.memory_space<vmem>>, vector<2x8x32xf32>,
    return
  }
  func.func @transform_0(%arg0: i32) -> (i32, i32, i32) {
    %c0_i32 = arith.constant 0 : i32
    %c0_i32_0 = arith.constant 0 : i32
    %c0_i32_1 = arith.constant 0 : i32
    return %arg0, %c0_i32, %c0_i32_0 : i32, i32, i32
  }
  func.func @transform_1(%arg0: i32) -> (i32, i32, i32) {
    %c0_i32 = arith.constant 0 : i32
    %c0_i32_0 = arith.constant 0 : i32
    %c0_i32_1 = arith.constant 0 : i32
    return %arg0, %c0_i32, %c0_i32_0 : i32, i32, i32
  }
  func.func @transform_2(%arg0: i32) -> (i32, i32) {
    %c0_i32 = arith.constant 0 : i32
    %c0_i32_0 = arith.constant 0 : i32
    %c0_i32_1 = arith.constant 0 : i32
    return %c0_i32, %c0_i32_0 : i32, i32
  }
  func.func @transform_3(%arg0: i32) -> (i32, i32) {
    %c0_i32 = arith.constant 0 : i32
    %c0_i32_0 = arith.constant 0 : i32
    %c0_i32_1 = arith.constant 0 : i32
    return %c0_i32, %c0_i32_0 : i32, i32
  }
  func.func @transform_4(%arg0: i32) -> (i32, i32) {
    %c0_i32 = arith.constant 0 : i32
    %c0_i32_0 = arith.constant 0 : i32
    %c0_i32_1 = arith.constant 0 : i32
    return %c0_i32, %c0_i32_0 : i32, i32
  }
  func.func @transform_5(%arg0: i32) -> (i32, i32) {
    %c0_i32 = arith.constant 0 : i32
    %c0_i32_0 = arith.constant 0 : i32
    %c0_i32_1 = arith.constant 0 : i32
    return %c0_i32, %c0_i32_0 : i32, i32
  }
  func.func @transform_6(%arg0: i32) -> (i32, i32) {
    %c0_i32 = arith.constant 0 : i32
    %c0_i32_0 = arith.constant 0 : i32
    %c0_i32_1 = arith.constant 0 : i32
    return %c0_i32, %c0_i32_0 : i32, i32
  }
  func.func @transform_7(%arg0: i32) -> (i32, i32, i32) {
    %c0_i32 = arith.constant 0 : i32
    %c0_i32_0 = arith.constant 0 : i32
    %c0_i32_1 = arith.constant 0 : i32
    return %arg0, %c0_i32, %c0_i32_0 : i32, i32, i32
  }
}

</mosaic_0001>

<bundles_post_ra>
// kernel: encoder_layer.1
= control target key start
LH: loop header
LB: loop body
LE: loop exit
PB: predicated region body
PF: predicated region fallthrough
CT: control target
= control target key end

     0   :  { %vm30_vm0 = vcmask 261120   ;;  %s1382_s0 = inlined_call_operand.vmem [shape: f32[2,8,32], index: 0, kind: input, shape index: {}]   ;;  %s1383_s1 = inlined_call_operand.vmem [shape: f32[1,16,16], index: 1, kind: input, shape index: {}]   ;;  %s1384_s2 = inlined_call_operand.vmem [shape: f32[8,128], index: 2, kind: input, shape index: {}]   ;;  %s1385_s3 = inlined_call_operand.vmem [shape: f32[32,96], index: 3, kind: input, shape index: {}]   ;;  %s1386_s4 = inlined_call_operand.vmem [shape: f32[32,32], index: 4, kind: input, shape index: {}]   ;;  %s1387_s5 = inlined_call_operand.vmem [shape: f32[32,64], index: 5, kind: input, shape index: {}]   ;;  %s1388_s6 = inlined_call_operand.vmem [shape: f32[64,32], index: 6, kind: input, shape index: {}]   ;;  %s1389_s7 = inlined_call_operand.hbm [shape: f32[2,8,32], index: 7, kind: output, shape index: {}]  }
   0x1   :  { %v1107_v0 = vld [vmem:[%s1382_s0] sm:$0xff] }
   0x2   :  { %v31_v1 = vsel %vm30_vm0, %v1107_v0, 0.0 }
   0x3   :  { %12 = vsyncpa [#allocation3], 0  ;;  %32 = vadd.xlane.f32.xlu0 %v31_v1  ;;  %v1114_v2 = vld [vmem:[%s1382_s0 + $0x8] sm:$0xff]  ;;  %v1046_v4 = vmov 32.0   ;;  %v1047_v21 = vmov 31.0   ;;  %v130_v27 = vld [vmem:[%s1385_s3 + $0x18] sm:$0xff] }
   0x4   :  { %v34_v3 = vsel %vm30_vm0, %v1114_v2, 0.0  ;;  %967 = vrcp.f32 %v1046_v4  ;;  %v129_v28 = vld [vmem:[%s1385_s3 + $0x10] sm:$0xff]  ;;  %150 = vmatpush.msra.mxu0 %v130_v27  ;;  %v128_v30 = vld [vmem:[%s1385_s3 + $0x8] sm:$0xff]  ;;  %v127_v32 = vld [vmem:[%s1385_s3] sm:$0xff]  ;;  %s1048_s13 = smov 88   ;;  %s1049_s14 = smov 80  }
   0x5   :  { %969 = vrcp.f32 %v1047_v21  ;;  %v1153_v59 = vld [vmem:[%s1384_s2] sm:$0xff]  ;;  %s1050_s15 = smov 96   ;;  %s1051_s16 = smov 112   ;;  %vm169_vm15 = vcmask 64512  }
   0x6   :  { %151 = vmatpush.msra.mxu0 %v129_v28  ;;  %v89_v62 = vperm.slane %v1153_v59, 0  ;;  %v131_v27 = vperm.slane %v1153_v59, 4  ;;  %s1052_s17 = smov 72   ;;  %s1053_s18 = smov 120  }
   0x7   :  { %s1054_s19 = smov 104   ;;  %s1056_s24 = smov 64  }
   0x8   :  { %152 = vmatpush.msra.mxu0 %v128_v30  ;;  %s1057_s25 = smov 48   ;;  %s1058_s26 = smov 40  }
   0x9   :  { %s1059_s27 = smov 16   ;;  %s1060_s0 = smov 8  }
   0xa   :  { %v968_v5 = vpop.eup %967  ;;  %153 = vmatpush.msra.mxu0 %v127_v32  ;;  %s1061_s28 = smov 24  }
   0xb   :  { %35 = vadd.xlane.f32.xlu0 %v34_v3  ;;  %v38_v6 = vmul.f32 32.0, %v968_v5  ;;  %vm42_vm1 = vweird.f32 %v968_v5  ;;  %v970_v22 = vpop.eup %969 }
   0xc   :  { %v57_v23 = vmul.f32 31.0, %v970_v22  ;;  %vm61_vm2 = vweird.f32 %v970_v22 }
   0xd   :  { %v39_v7 = vsub.f32 1.0, %v38_v6 }
   0xe   :  { %v58_v24 = vsub.f32 1.0, %v57_v23 }
   0xf   :  { %v40_v8 = vmul.f32 %v968_v5, %v39_v7 }
  0x10   :  { %v59_v25 = vmul.f32 %v970_v22, %v58_v24 }
  0x11   :  { %v41_v9 = vadd.f32 %v968_v5, %v40_v8 }
  0x12   :  { %v60_v26 = vadd.f32 %v970_v22, %v59_v25 }
  0x13   :  { %v1118_v10 = vsel %vm42_vm1, %v968_v5, %v41_v9  ;;  %v124_v9 = vperm.slane %v1153_v59, 1  ;;  %vm201_vm1 = vcmask 130048  }
  0x14   :  { %v1140_v29 = vsel %vm61_vm2, %v970_v22, %v60_v26 }
  0x76   :  { %v33_v11 = vpop.xlane.xlu0 %32 }
  0x77   :  { %v44_v12 = vmul.f32 %v1118_v10, %v33_v11 }
  0x79   :  { %v1122_v13 = vsub.f32 %v1107_v0, %v44_v12 }
  0x7b   :  { %v48_v14 = vmul.f32 %v1122_v13, %v1122_v13  ;;  %v90_v6 = vmul.f32 %v89_v62, %v1122_v13 }
  0x7d   :  { %v50_v15 = vsel %vm30_vm0, %v48_v14, 0.0 }
  0x7e   :  { %51 = vadd.xlane.f32.xlu1 %v50_v15  ;;  %v36_v16 = vpop.xlane.xlu0 %35 }
  0x7f   :  { %v45_v17 = vmul.f32 %v1118_v10, %v36_v16 }
  0x81   :  { %v1129_v18 = vsub.f32 %v1114_v2, %v45_v17 }
  0x83   :  { %v49_v19 = vmul.f32 %v1129_v18, %v1129_v18  ;;  %v91_v22 = vmul.f32 %v89_v62, %v1129_v18 }
  0x85   :  { %v53_v20 = vsel %vm30_vm0, %v49_v19, 0.0 }
  0x86   :  { %54 = vadd.xlane.f32.xlu1 %v53_v20 }
  0xf1   :  { %v52_v31 = vpop.xlane.xlu1 %51 }
  0xf2   :  { %v63_v33 = vmul.f32 %v1140_v29, %v52_v31 }
  0xf4   :  { %971 = vrsqrt.f32 %v63_v33  ;;  %vm72_vm3 = vcmp.eq.f32.partialorder %v63_v33, inf  ;;  %v75_v46 = vand.u32 2147483648, %v63_v33  ;;  %vm74_vm4 = vcmp.eq.f32.partialorder %v63_v33, 0.0 }
  0xf9   :  { %v55_v34 = vpop.xlane.xlu1 %54 }
  0xfa   :  { %v972_v35 = vpop.eup %971  ;;  %v64_v36 = vmul.f32 %v1140_v29, %v55_v34 }
  0xfb   :  { %v66_v37 = vmul.f32 %v972_v35, %v63_v33 }
  0xfc   :  { %973 = vrsqrt.f32 %v64_v36  ;;  %vm84_vm5 = vcmp.eq.f32.partialorder %v64_v36, inf  ;;  %v87_v54 = vand.u32 2147483648, %v64_v36  ;;  %vm86_vm6 = vcmp.eq.f32.partialorder %v64_v36, 0.0 }
  0xfd   :  { %v67_v38 = vmul.f32 %v972_v35, %v66_v37 }
  0xff   :  { %v68_v39 = vmul.f32 0.5, %v67_v38 }
 0x101   :  { %v69_v40 = vsub.f32 1.5, %v68_v39 }
 0x102   :  { %v974_v41 = vpop.eup %973 }
 0x103   :  { %v70_v42 = vmul.f32 %v972_v35, %v69_v40  ;;  %v78_v43 = vmul.f32 %v974_v41, %v64_v36 }
 0x105   :  { %v71_v44 = vmul.f32 %v70_v42, %v63_v33  ;;  %v79_v45 = vmul.f32 %v974_v41, %v78_v43 }
 0x107   :  { %v80_v47 = vmul.f32 0.5, %v79_v45  ;;  %v73_v48 = vsel %vm72_vm3, %v63_v33, %v71_v44 }
 0x108   :  { %v76_v49 = vsel %vm74_vm4, %v75_v46, %v73_v48  ;;  %v161_v46 = vld [vmem:[%s1383_s1] sm:$0xff] }
 0x109   :  { %v81_v50 = vsub.f32 1.5, %v80_v47  ;;  %v92_v51 = vadd.f32 1e-06, %v76_v49 }
 0x10b   :  { %v82_v52 = vmul.f32 %v974_v41, %v81_v50  ;;  %975 = vrcp.f32 %v92_v51  ;;  %v105_v63 = vand.u32 2147483648, %v92_v51  ;;  %v103_v3 = vand.u32 2147483647, %v92_v51  ;;  %v162_v50 = vld [vmem:[%s1383_s1 + $0x8] sm:$0xff]  ;;  %s1055_s1 = smov 56  }
 0x10c   :  { %vm99_vm8 = vweird.f32 %v92_v51 }
 0x10d   :  { %v83_v53 = vmul.f32 %v82_v52, %v64_v36  ;;  %v106_v7 = vor.u32 1.1754944e-38, %v105_v63  ;;  %vm104_vm10 = vcmp.eq.f32.partialorder %v103_v3, 8.507059e+37 }
 0x10f   :  { %v85_v55 = vsel %vm84_vm5, %v64_v36, %v83_v53 }
 0x110   :  { %v88_v56 = vsel %vm86_vm6, %v87_v54, %v85_v55 }
 0x111   :  { %v976_v57 = vpop.eup %975  ;;  %v93_v58 = vadd.f32 1e-06, %v88_v56 }
 0x112   :  { %v95_v60 = vmul.f32 %v976_v57, %v92_v51  ;;  %vm100_vm7 = vweird.f32 %v976_v57 }
 0x113   :  { %977 = vrcp.f32 %v93_v58  ;;  %vm101_vm9 = vmor %vm99_vm8, %vm100_vm7  ;;  %v120_v16 = vand.u32 2147483648, %v93_v58  ;;  %v118_v20 = vand.u32 2147483647, %v93_v58  ;;  %vm114_vm12 = vweird.f32 %v93_v58 }
 0x114   :  { %v96_v61 = vsub.f32 1.0, %v95_v60 }
 0x115   :  { %v121_v13 = vor.u32 1.1754944e-38, %v120_v16  ;;  %vm119_vm14 = vcmp.eq.f32.partialorder %v118_v20, 8.507059e+37 }
 0x116   :  { %v97_v1 = vmul.f32 %v976_v57, %v96_v61 }
 0x118   :  { %v98_v4 = vadd.f32 %v976_v57, %v97_v1 }
 0x119   :  { %v978_v5 = vpop.eup %977 }
 0x11a   :  { %v102_v8 = vsel %vm101_vm9, %v976_v57, %v98_v4  ;;  %v110_v11 = vmul.f32 %v978_v5, %v93_v58  ;;  %vm115_vm11 = vweird.f32 %v978_v5 }
 0x11b   :  { %v107_v12 = vsel %vm104_vm10, %v106_v7, %v102_v8  ;;  %vm116_vm13 = vmor %vm114_vm12, %vm115_vm11 }
 0x11c   :  { %v108_v14 = vmul.f32 %v107_v12, %v90_v6  ;;  %v111_v15 = vsub.f32 1.0, %v110_v11 }
 0x11e   :  { %v125_v17 = vadd.f32 %v124_v9, %v108_v14  ;;  %v112_v19 = vmul.f32 %v978_v5, %v111_v15 }
 0x120   :  { %897 = vmatmul.msk.f32.vlgmr.msra.gmra.mxu0 %vm30_vm0, %v125_v17  ;;  %v113_v21 = vadd.f32 %v978_v5, %v112_v19 }
 0x122   :  { %v117_v23 = vsel %vm116_vm13, %v978_v5, %v113_v21 }
 0x123   :  { %v122_v24 = vsel %vm119_vm14, %v121_v13, %v117_v23 }
 0x124   :  { %v123_v25 = vmul.f32 %v122_v24, %v91_v22 }
 0x126   :  { %v126_v26 = vadd.f32 %v124_v9, %v123_v25 }
 0x128   :  { %898 = vmatmul.msk.f32.gmra.mxu0 %vm30_vm0, %v126_v26 }
 0x19d   :  { %v155_v28 = vpop.f32.mrf.mxu0 }
 0x19e   :  { %v1162_v30 = vadd.f32 %v155_v28, %v131_v27 }
 0x1a0   :  { %289 = vrot.lane.b32.xlu1 %v1162_v30, %s1048_s13 }
 0x1a5   :  { %v158_v31 = vpop.f32.mrf.mxu0 }
 0x1a6   :  { %v1165_v32 = vadd.f32 %v158_v31, %v131_v27 }
 0x1a8   :  { %413 = vrot.lane.b32.xlu1 %v1165_v32, %s1049_s14  ;;  %291 = vrot.lane.b32.xlu0 %v1165_v32, %s1048_s13  ;;  %v1214_v12 = vpack.i.bf16 %v1162_v30, %v1165_v32  ;;  %s885_s13 = sshll.u32 %s1389_s7, 4  ;;  %s886_s13 = int_to_ptr.hbm [resolvable:$true] %s885_s13 }
 0x1a9   :  { %167 = vrot.lane.b32.xlu2 %v1165_v32, %s1050_s15 }
 0x1b0   :  { %407 = vrot.lane.b32.xlu1 %v1162_v30, %s1051_s16  ;;  %533 = vrot.lane.b32.xlu0 %v1162_v30, %s1052_s17 }
 0x1b1   :  { %165 = vrot.lane.b32.xlu2 %v1162_v30, %s1050_s15 }
 0x1b8   :  { %411 = vrot.lane.b32.xlu0 %v1162_v30, %s1049_s14  ;;  %s1063_s14 = smov 128  }
 0x1b9   :  { %285 = vrot.lane.b32.xlu2 %v1162_v30, %s1053_s18 }
 0x1c0   :  { %409 = vrot.lane.b32.xlu0 %v1165_v32, %s1051_s16 }
 0x1c1   :  { %287 = vrot.lane.b32.xlu2 %v1165_v32, %s1053_s18 }
 0x1c9   :  { %535 = vrot.lane.b32.xlu2 %v1165_v32, %s1052_s17 }
 0x1d1   :  { %529 = vrot.lane.b32.xlu2 %v1162_v30, %s1054_s19 }
 0x1d9   :  { %531 = vrot.lane.b32.xlu2 %v1165_v32, %s1054_s19 }
 0x203   :  { %v168_v18 = vpop.permute.xlu2 %167 }
 0x204   :  { %899 = vmatpush.xpose.msk.msra.mxu1 %vm169_vm15, %v168_v18 }
 0x20b   :  { %v166_v33 = vpop.permute.xlu2 %165 }
 0x20c   :  { %900 = vmatpush.xpose.msk.msra.mxu1 %vm169_vm15, %v166_v33 }
 0x20f   :  { %901 = vmatmul.msk.f32.vlgmr.msra.gmra.mxu1 %vm169_vm15, %v1162_v30 }
 0x212   :  { %v290_v34 = vpop.permute.xlu1 %289 }
 0x213   :  { %v286_v35 = vpop.permute.xlu2 %285 }
 0x217   :  { %902 = vmatmul.msk.f32.gmra.mxu1 %vm169_vm15, %v1165_v32 }
 0x21a   :  { %v292_v36 = vpop.permute.xlu0 %291  ;;  %v414_v37 = vpop.permute.xlu1 %413 }
 0x21b   :  { %v288_v38 = vpop.permute.xlu2 %287  ;;  %905 = vmatpush.xpose.msk.msra.mxu3 %vm169_vm15, %v292_v36  ;;  %911 = vmatpush.xpose.msk.msrb.mxu0 %vm169_vm15, %v414_v37 }
 0x21f   :  { %906 = vmatpush.xpose.msk.msra.mxu3 %vm169_vm15, %v290_v34 }
 0x222   :  { %v534_v39 = vpop.permute.xlu0 %533  ;;  %907 = vmatmul.msk.f32.vlgmr.msra.gmra.mxu3 %vm169_vm15, %v286_v35  ;;  %v408_v42 = vpop.permute.xlu1 %407 }
 0x223   :  { %v536_v40 = vpop.permute.xlu2 %535 }
 0x224   :  { %917 = vmatpush.xpose.msk.msrb.mxu3 %vm169_vm15, %v536_v40 }
 0x228   :  { %918 = vmatpush.xpose.msk.msrb.mxu3 %vm169_vm15, %v534_v39 }
 0x22a   :  { %v412_v41 = vpop.permute.xlu0 %411  ;;  %908 = vmatmul.msk.f32.gmra.mxu3 %vm169_vm15, %v288_v38 }
 0x22b   :  { %912 = vmatpush.xpose.msk.msrb.mxu0 %vm169_vm15, %v412_v41  ;;  %v530_v43 = vpop.permute.xlu2 %529 }
 0x22e   :  { %913 = vmatmul.msk.f32.vlgmr.msrb.gmra.mxu0 %vm169_vm15, %v408_v42 }
 0x232   :  { %919 = vmatmul.msk.f32.vlgmr.msrb.gmra.mxu3 %vm169_vm15, %v530_v43  ;;  %v410_v44 = vpop.permute.xlu0 %409 }
 0x233   :  { %v532_v45 = vpop.permute.xlu2 %531 }
 0x236   :  { %914 = vmatmul.msk.f32.gmra.mxu0 %vm169_vm15, %v410_v44 }
 0x23a   :  { %920 = vmatmul.msk.f32.gmra.mxu3 %vm169_vm15, %v532_v45 }
 0x28c   :  { %v195_v47 = vpop.f32.mrf.mxu1 }
 0x28d   :  { %v196_v48 = vadd.f32 %v195_v47, %v161_v46 }
 0x28f   :  { %v202_v49 = vsel %vm201_vm1, %v196_v48, -inf }
 0x290   :  { %203 = vmax.xlane.f32.xlu2 %v202_v49 }
 0x294   :  { %v198_v51 = vpop.f32.mrf.mxu1 }
 0x295   :  { %v199_v52 = vadd.f32 %v198_v51, %v162_v50 }
 0x297   :  { %v205_v53 = vsel %vm201_vm1, %v199_v52, -inf }
 0x298   :  { %206 = vmax.xlane.f32.xlu1 %v205_v53 }
 0x2a5   :  { %v318_v54 = vpop.f32.mrf.mxu3 }
 0x2a6   :  { %v319_v55 = vadd.f32 %v318_v54, %v161_v46 }
 0x2a8   :  { %v324_v56 = vsel %vm201_vm1, %v319_v55, -inf }
 0x2a9   :  { %325 = vmax.xlane.f32.xlu0 %v324_v56 }
 0x2ab   :  { %v440_v57 = vpop.f32.mrf.mxu0 }
 0x2ac   :  { %v441_v58 = vadd.f32 %v440_v57, %v161_v46 }
 0x2ad   :  { %v321_v60 = vpop.f32.mrf.mxu3 }
 0x2ae   :  { %v322_v61 = vadd.f32 %v321_v60, %v162_v50  ;;  %v446_v63 = vsel %vm201_vm1, %v441_v58, -inf }
 0x2b0   :  { %v327_v62 = vsel %vm201_vm1, %v322_v61, -inf }
 0x2b1   :  { %328 = vmax.xlane.f32.xlu2 %v327_v62  ;;  %447 = vmax.xlane.f32.xlu0 %v446_v63 }
 0x2b3   :  { %v443_v1 = vpop.f32.mrf.mxu0 }
 0x2b4   :  { %v444_v3 = vadd.f32 %v443_v1, %v162_v50 }
 0x2b5   :  { %v562_v4 = vpop.f32.mrf.mxu3 }
 0x2b6   :  { %v449_v5 = vsel %vm201_vm1, %v444_v3, -inf  ;;  %v563_v6 = vadd.f32 %v562_v4, %v161_v46 }
 0x2b7   :  { %450 = vmax.xlane.f32.xlu1 %v449_v5 }
 0x2b8   :  { %v568_v9 = vsel %vm201_vm1, %v563_v6, -inf }
 0x2bd   :  { %v565_v7 = vpop.f32.mrf.mxu3 }
 0x2be   :  { %v566_v8 = vadd.f32 %v565_v7, %v162_v50 }
 0x2bf   :  { %569 = vmax.xlane.f32.xlu1 %v568_v9 }
 0x2c0   :  { %v571_v11 = vsel %vm201_vm1, %v566_v8, -inf }
 0x2c1   :  { %572 = vmax.xlane.f32.xlu2 %v571_v11 }
 0x2d9   :  { %953 = vrot.lane.b32.xlu2 %v1214_v12, %s1055_s1 }
 0x303   :  { %v204_v14 = vpop.xlane.xlu2 %203 }
 0x304   :  { %v208_v15 = vsub.f32 %v196_v48, %v204_v14 }
 0x306   :  { %v210_v16 = vmul.f32 1.442695, %v208_v15 }
 0x308   :  { %979 = vpow2.f32 %v210_v16 }
 0x30b   :  { %v207_v17 = vpop.xlane.xlu1 %206 }
 0x30c   :  { %v209_v19 = vsub.f32 %v199_v52, %v207_v17 }
 0x30e   :  { %v1217_v20 = vpop.eup %979  ;;  %v212_v21 = vmul.f32 1.442695, %v209_v19 }
 0x30f   :  { %v214_v13 = vsel %vm201_vm1, %v1217_v20, 0.0 }
 0x310   :  { %981 = vpow2.f32 %v212_v21  ;;  %215 = vadd.xlane.f32.xlu0 %v214_v13 }
 0x316   :  { %v1221_v22 = vpop.eup %981 }
 0x317   :  { %v217_v23 = vsel %vm201_vm1, %v1221_v22, 0.0 }
 0x318   :  { %218 = vadd.xlane.f32.xlu2 %v217_v23 }
 0x31c   :  { %v326_v24 = vpop.xlane.xlu0 %325 }
 0x31d   :  { %v330_v32 = vsub.f32 %v319_v55, %v326_v24 }
 0x31f   :  { %v332_v33 = vmul.f32 1.442695, %v330_v32 }
 0x324   :  { %948 = vrot.lane.b32.xlu0 %v1214_v12, %s1056_s24  ;;  %v329_v25 = vpop.xlane.xlu2 %328  ;;  %v448_v26 = vpop.xlane.xlu0 %447 }
 0x325   :  { %v331_v27 = vsub.f32 %v322_v61, %v329_v25  ;;  %v452_v28 = vsub.f32 %v441_v58, %v448_v26 }
 0x327   :  { %v334_v30 = vmul.f32 1.442695, %v331_v27  ;;  %v454_v31 = vmul.f32 1.442695, %v452_v28 }
 0x329   :  { %983 = vpow2.f32 %v334_v30 }
 0x32a   :  { %985 = vpow2.f32 %v454_v31  ;;  %v451_v18 = vpop.xlane.xlu1 %450 }
 0x32b   :  { %987 = vpow2.f32 %v332_v33  ;;  %v453_v42 = vsub.f32 %v444_v3, %v451_v18 }
 0x32d   :  { %v456_v45 = vmul.f32 1.442695, %v453_v42 }
 0x32f   :  { %v1226_v34 = vpop.eup %983 }
 0x330   :  { %v1228_v35 = vpop.eup %985  ;;  %v339_v36 = vsel %vm201_vm1, %v1226_v34, 0.0 }
 0x331   :  { %v458_v37 = vsel %vm201_vm1, %v1228_v35, 0.0  ;;  %340 = vadd.xlane.f32.xlu2 %v339_v36  ;;  %v1234_v41 = vpop.eup %987 }
 0x332   :  { %459 = vadd.xlane.f32.xlu1 %v458_v37  ;;  %v570_v38 = vpop.xlane.xlu1 %569  ;;  %v336_v44 = vsel %vm201_vm1, %v1234_v41, 0.0 }
 0x333   :  { %v574_v39 = vsub.f32 %v563_v6, %v570_v38 }
 0x334   :  { %v573_v43 = vpop.xlane.xlu2 %572 }
 0x335   :  { %v576_v40 = vmul.f32 1.442695, %v574_v39  ;;  %v575_v46 = vsub.f32 %v566_v8, %v573_v43 }
 0x337   :  { %989 = vpow2.f32 %v576_v40  ;;  %v578_v48 = vmul.f32 1.442695, %v575_v46 }
 0x338   :  { %991 = vpow2.f32 %v456_v45 }
 0x339   :  { %993 = vpow2.f32 %v578_v48 }
 0x33a   :  { %337 = vadd.xlane.f32.xlu1 %v336_v44 }
 0x33c   :  { %v954_v54 = vpop.permute.xlu2 %953 }
 0x33d   :  { %v1238_v47 = vpop.eup %989  ;;  %v955_v21 = vunpack.i.l.bf16 %v954_v54  ;;  %v956_v24 = vunpack.i.h.bf16 %v954_v54 }
 0x33e   :  { %v580_v49 = vsel %vm201_vm1, %v1238_v47, 0.0  ;;  %v1242_v50 = vpop.eup %991 }
 0x33f   :  { %v461_v51 = vsel %vm201_vm1, %v1242_v50, 0.0  ;;  %v1247_v52 = vpop.eup %993 }
 0x340   :  { %v583_v53 = vsel %vm201_vm1, %v1247_v52, 0.0 }
 0x342   :  { %581 = vadd.xlane.f32.xlu1 %v580_v49 }
 0x349   :  { %963 = vrot.lane.b32.xlu2 %v1214_v12, %s1057_s25 }
 0x34a   :  { %462 = vadd.xlane.f32.xlu1 %v461_v51 }
 0x34e   :  { %584 = vadd.xlane.f32.xlu0 %v583_v53 }
 0x363   :  { %958 = vrot.lane.b32.xlu1 %v1214_v12, %s1058_s26 }
 0x383   :  { %v216_v55 = vpop.xlane.xlu0 %215 }
 0x384   :  { %995 = vrcp.f32 %v216_v55  ;;  %v231_v62 = vand.u32 2147483648, %v216_v55  ;;  %vm225_vm3 = vweird.f32 %v216_v55  ;;  %v229_v3 = vand.u32 2147483647, %v216_v55 }
 0x386   :  { %v232_v6 = vor.u32 1.1754944e-38, %v231_v62  ;;  %vm230_vm5 = vcmp.eq.f32.partialorder %v229_v3, 8.507059e+37 }
 0x38a   :  { %v996_v56 = vpop.eup %995 }
 0x38b   :  { %v221_v57 = vmul.f32 %v996_v56, %v216_v55  ;;  %v219_v58 = vpop.xlane.xlu2 %218  ;;  %vm226_vm2 = vweird.f32 %v996_v56 }
 0x38c   :  { %997 = vrcp.f32 %v219_v58  ;;  %vm227_vm4 = vmor %vm225_vm3, %vm226_vm2  ;;  %v246_v14 = vand.u32 2147483648, %v219_v58  ;;  %vm240_vm7 = vweird.f32 %v219_v58  ;;  %v244_v19 = vand.u32 2147483647, %v219_v58 }
 0x38d   :  { %v222_v60 = vsub.f32 1.0, %v221_v57 }
 0x38e   :  { %v247_v23 = vor.u32 1.1754944e-38, %v246_v14  ;;  %vm245_vm9 = vcmp.eq.f32.partialorder %v244_v19, 8.507059e+37 }
 0x38f   :  { %v223_v61 = vmul.f32 %v996_v56, %v222_v60 }
 0x391   :  { %v224_v63 = vadd.f32 %v996_v56, %v223_v61 }
 0x392   :  { %v998_v1 = vpop.eup %997 }
 0x393   :  { %v236_v4 = vmul.f32 %v998_v1, %v219_v58  ;;  %v228_v5 = vsel %vm227_vm4, %v996_v56, %v224_v63  ;;  %vm241_vm6 = vweird.f32 %v998_v1 }
 0x394   :  { %v233_v12 = vsel %vm230_vm5, %v232_v6, %v228_v5  ;;  %vm242_vm8 = vmor %vm240_vm7, %vm241_vm6 }
 0x395   :  { %v237_v7 = vsub.f32 1.0, %v236_v4  ;;  %v234_v17 = vmul.f32 %v1217_v20, %v233_v12 }
 0x396   :  { %v949_v8 = vpop.permute.xlu0 %948 }
 0x397   :  { %v238_v9 = vmul.f32 %v998_v1, %v237_v7  ;;  %v950_v11 = vunpack.i.l.bf16 %v949_v8  ;;  %v951_v15 = vunpack.i.h.bf16 %v949_v8 }
 0x399   :  { %276 = vmatpush.msra.mxu2 %v950_v11  ;;  %v239_v16 = vadd.f32 %v998_v1, %v238_v9 }
 0x39b   :  { %277 = vmatpush.msra.mxu2 %v951_v15  ;;  %v243_v13 = vsel %vm242_vm8, %v998_v1, %v239_v16 }
 0x39c   :  { %903 = vmatmul.msk.f32.vlgmr.msra.gmra.mxu2 %vm201_vm1, %v234_v17  ;;  %v248_v25 = vsel %vm245_vm9, %v247_v23, %v243_v13 }
 0x39d   :  { %398 = vmatpush.msrb.mxu2 %v955_v21  ;;  %v249_v26 = vmul.f32 %v1221_v22, %v248_v25 }
 0x39f   :  { %399 = vmatpush.msrb.mxu2 %v956_v24 }
 0x3a4   :  { %904 = vmatmul.msk.f32.gmra.mxu2 %vm201_vm1, %v249_v26  ;;  %v1256_v27 = vpop.xlane.xlu2 %340 }
 0x3a5   :  { %v460_v20 = vpop.xlane.xlu1 %459  ;;  %v368_v3 = vand.u32 2147483648, %v1256_v27  ;;  %vm362_vm6 = vweird.f32 %v1256_v27  ;;  %v366_v5 = vand.u32 2147483647, %v1256_v27 }
 0x3a6   :  { %999 = vrcp.f32 %v460_v20  ;;  %v475_v39 = vand.u32 2147483648, %v460_v20  ;;  %v473_v40 = vand.u32 2147483647, %v460_v20  ;;  %vm469_vm11 = vweird.f32 %v460_v20 }
 0x3a7   :  { %1001 = vrcp.f32 %v1256_v27  ;;  %v369_v9 = vor.u32 1.1754944e-38, %v368_v3  ;;  %vm367_vm8 = vcmp.eq.f32.partialorder %v366_v5, 8.507059e+37 }
 0x3a8   :  { %v476_v45 = vor.u32 1.1754944e-38, %v475_v39  ;;  %vm474_vm13 = vcmp.eq.f32.partialorder %v473_v40, 8.507059e+37 }
 0x3ac   :  { %v1000_v28 = vpop.eup %999  ;;  %v964_v30 = vpop.permute.xlu2 %963 }
 0x3ad   :  { %v465_v31 = vmul.f32 %v1000_v28, %v460_v20  ;;  %v338_v32 = vpop.xlane.xlu1 %337  ;;  %v965_v18 = vunpack.i.l.bf16 %v964_v30  ;;  %v1002_v33 = vpop.eup %1001  ;;  %v966_v37 = vunpack.i.h.bf16 %v964_v30  ;;  %vm470_vm10 = vweird.f32 %v1000_v28 }
 0x3ae   :  { %1003 = vrcp.f32 %v338_v32  ;;  %v358_v22 = vmul.f32 %v1002_v33, %v1256_v27  ;;  %vm471_vm12 = vmor %vm469_vm11, %vm470_vm10  ;;  %v353_v54 = vand.u32 2147483648, %v338_v32  ;;  %v351_v58 = vand.u32 2147483647, %v338_v32 }
 0x3af   :  { %v466_v36 = vsub.f32 1.0, %v465_v31  ;;  %520 = vmatpush.msrb.mxu1 %v965_v18  ;;  %vm347_vm2 = vweird.f32 %v338_v32  ;;  %vm363_vm5 = vweird.f32 %v1002_v33 }
 0x3b0   :  { %v359_v44 = vsub.f32 1.0, %v358_v22  ;;  %v354_v61 = vor.u32 1.1754944e-38, %v353_v54  ;;  %vm352_vm4 = vcmp.eq.f32.partialorder %v351_v58, 8.507059e+37  ;;  %vm364_vm7 = vmor %vm362_vm6, %vm363_vm5  ;;  %v685_v58 = vld [vmem:[%s1386_s4 + $0x18] sm:$0xff] }
 0x3b1   :  { %v467_v38 = vmul.f32 %v1000_v28, %v466_v36  ;;  %521 = vmatpush.msrb.mxu1 %v966_v37  ;;  %705 = vmatpush.msra.mxu0 %v685_v58  ;;  %v840_v58 = vld [vmem:[%s1388_s6 + $0x20] sm:$0xff] }
 0x3b2   :  { %v360_v56 = vmul.f32 %v1002_v33, %v359_v44 }
 0x3b3   :  { %v468_v42 = vadd.f32 %v1000_v28, %v467_v38 }
 0x3b4   :  { %v1004_v43 = vpop.eup %1003  ;;  %v361_v1 = vadd.f32 %v1002_v33, %v360_v56 }
 0x3b5   :  { %v343_v46 = vmul.f32 %v1004_v43, %v338_v32  ;;  %v1260_v48 = vpop.xlane.xlu1 %581  ;;  %v472_v49 = vsel %vm471_vm12, %v1000_v28, %v468_v42  ;;  %vm348_vm14 = vweird.f32 %v1004_v43 }
 0x3b6   :  { %v477_v53 = vsel %vm474_vm13, %v476_v45, %v472_v49  ;;  %1005 = vrcp.f32 %v1260_v48  ;;  %vm349_vm3 = vmor %vm347_vm2, %vm348_vm14  ;;  %v365_v8 = vsel %vm364_vm7, %v1002_v33, %v361_v1  ;;  %v597_v32 = vand.u32 2147483648, %v1260_v48 }
 0x3b7   :  { %v344_v51 = vsub.f32 1.0, %v343_v46  ;;  %v478_v55 = vmul.f32 %v1228_v35, %v477_v53  ;;  %v370_v14 = vsel %vm367_vm8, %v369_v9, %v365_v8  ;;  %vm591_vm14 = vweird.f32 %v1260_v48 }
 0x3b8   :  { %v595_v18 = vand.u32 2147483647, %v1260_v48  ;;  %v598_v37 = vor.u32 1.1754944e-38, %v597_v32  ;;  %vm679_vm8 = vcmask 195584   ;;  %v802_v32 = vld [vmem:[%s1387_s5 + $0x10] sm:$0xff] }
 0x3b9   :  { %v345_v57 = vmul.f32 %v1004_v43, %v344_v51  ;;  %915 = vmatmul.msk.f32.vlgmr.msrb.gmra.mxu1 %vm201_vm1, %v478_v55 }
 0x3bb   :  { %v346_v60 = vadd.f32 %v1004_v43, %v345_v57 }
 0x3bc   :  { %v1006_v6 = vpop.eup %1005 }
 0x3bd   :  { %v463_v62 = vpop.xlane.xlu1 %462  ;;  %v350_v63 = vsel %vm349_vm3, %v1004_v43, %v346_v60  ;;  %v587_v11 = vmul.f32 %v1006_v6, %v1260_v48  ;;  %vm592_vm13 = vweird.f32 %v1006_v6  ;;  %vm596_vm3 = vcmp.eq.f32.partialorder %v595_v18, 8.507059e+37  ;;  %v684_v60 = vld [vmem:[%s1386_s4 + $0x10] sm:$0xff] }
 0x3be   :  { %1007 = vrcp.f32 %v463_v62  ;;  %v355_v35 = vsel %vm352_vm4, %v354_v61, %v350_v63  ;;  %v490_v21 = vand.u32 2147483648, %v463_v62  ;;  %v488_v23 = vand.u32 2147483647, %v463_v62  ;;  %vm593_vm2 = vmor %vm591_vm14, %vm592_vm13  ;;  %v683_v61 = vld [vmem:[%s1386_s4 + $0x8] sm:$0xff]  ;;  %706 = vmatpush.msra.mxu0 %v684_v60 }
 0x3bf   :  { %v356_v4 = vmul.f32 %v1234_v41, %v355_v35  ;;  %v588_v16 = vsub.f32 1.0, %v587_v11  ;;  %v371_v41 = vmul.f32 %v1226_v34, %v370_v14  ;;  %vm484_vm10 = vweird.f32 %v463_v62 }
 0x3c0   :  { %v491_v27 = vor.u32 1.1754944e-38, %v490_v21  ;;  %vm489_vm12 = vcmp.eq.f32.partialorder %v488_v23, 8.507059e+37  ;;  %707 = vmatpush.msra.mxu0 %v683_v61  ;;  %v686_v14 = vperm.slane %v1153_v59, 5 }
 0x3c1   :  { %v585_v7 = vpop.xlane.xlu0 %584  ;;  %909 = vmatmul.msk.f32.vlgmr.msrb.gmra.mxu2 %vm201_vm1, %v356_v4  ;;  %v589_v24 = vmul.f32 %v1006_v6, %v588_v16 }
 0x3c2   :  { %1009 = vrcp.f32 %v585_v7  ;;  %v612_v42 = vand.u32 2147483648, %v585_v7  ;;  %vm606_vm5 = vweird.f32 %v585_v7  ;;  %v610_v44 = vand.u32 2147483647, %v585_v7 }
 0x3c3   :  { %v590_v30 = vadd.f32 %v1006_v6, %v589_v24 }
 0x3c4   :  { %v1008_v12 = vpop.eup %1007  ;;  %v613_v46 = vor.u32 1.1754944e-38, %v612_v42  ;;  %vm611_vm7 = vcmp.eq.f32.partialorder %v610_v44, 8.507059e+37 }
 0x3c5   :  { %v480_v15 = vmul.f32 %v1008_v12, %v463_v62  ;;  %vm485_vm9 = vweird.f32 %v1008_v12  ;;  %v594_v33 = vsel %vm593_vm2, %v1006_v6, %v590_v30  ;;  %v682_v62 = vld [vmem:[%s1386_s4] sm:$0xff] }
 0x3c6   :  { %vm486_vm11 = vmor %vm484_vm10, %vm485_vm9  ;;  %v599_v38 = vsel %vm596_vm3, %v598_v37, %v594_v33  ;;  %708 = vmatpush.msra.mxu0 %v682_v62  ;;  %v800_v33 = vld [vmem:[%s1387_s5] sm:$0xff]  ;;  %v839_v62 = vld [vmem:[%s1388_s6 + $0x18] sm:$0xff] }
 0x3c7   :  { %v481_v17 = vsub.f32 1.0, %v480_v15  ;;  %v600_v43 = vmul.f32 %v1238_v47, %v599_v38 }
 0x3c8   :  { %v1010_v19 = vpop.eup %1009 }
 0x3c9   :  { %v482_v13 = vmul.f32 %v1008_v12, %v481_v17  ;;  %910 = vmatmul.msk.f32.gmra.mxu2 %vm201_vm1, %v371_v41  ;;  %v602_v25 = vmul.f32 %v1010_v19, %v585_v7  ;;  %vm607_vm4 = vweird.f32 %v1010_v19 }
 0x3ca   :  { %vm608_vm6 = vmor %vm606_vm5, %vm607_vm4 }
 0x3cb   :  { %v483_v26 = vadd.f32 %v1008_v12, %v482_v13  ;;  %v603_v31 = vsub.f32 1.0, %v602_v25 }
 0x3cd   :  { %v487_v20 = vsel %vm486_vm11, %v1008_v12, %v483_v26  ;;  %v604_v36 = vmul.f32 %v1010_v19, %v603_v31 }
 0x3ce   :  { %v492_v28 = vsel %vm489_vm12, %v491_v27, %v487_v20 }
 0x3cf   :  { %v493_v34 = vmul.f32 %v1242_v50, %v492_v28  ;;  %v605_v40 = vadd.f32 %v1010_v19, %v604_v36 }
 0x3d1   :  { %916 = vmatmul.msk.f32.gmra.mxu1 %vm201_vm1, %v493_v34  ;;  %v609_v45 = vsel %vm608_vm6, %v1010_v19, %v605_v40  ;;  %v803_v34 = vld [vmem:[%s1387_s5 + $0x18] sm:$0xff]  ;;  %vm845_vm6 = vcmask 523264  }
 0x3d2   :  { %v614_v48 = vsel %vm611_vm7, %v613_v46, %v609_v45  ;;  %823 = vmatpush.msra.mxu1 %v803_v34 }
 0x3d3   :  { %v615_v49 = vmul.f32 %v1247_v52, %v614_v48 }
 0x3d4   :  { %824 = vmatpush.msra.mxu1 %v802_v32 }
 0x3d5   :  { %v959_v22 = vpop.permute.xlu1 %958 }
 0x3d6   :  { %v960_v39 = vunpack.i.l.bf16 %v959_v22  ;;  %v961_v50 = vunpack.i.h.bf16 %v959_v22 }
 0x3d8   :  { %642 = vmatpush.msra.mxu2 %v960_v39 }
 0x3da   :  { %643 = vmatpush.msra.mxu2 %v961_v50 }
 0x3db   :  { %921 = vmatmul.msk.f32.vlgmr.msra.gmra.mxu2 %vm201_vm1, %v600_v43 }
 0x3e3   :  { %922 = vmatmul.msk.f32.gmra.mxu2 %vm201_vm1, %v615_v49 }
 0x41f   :  { %v279_v51 = vpop.f32.mrf.mxu2 }
 0x427   :  { %v282_v54 = vpop.f32.mrf.mxu2 }
 0x436   :  { %v523_v53 = vpop.f32.mrf.mxu1 }
 0x437   :  { %661 = vrot.lane.b32.xlu2 %v523_v53, %s1059_s27 }
 0x444   :  { %v401_v55 = vpop.f32.mrf.mxu2 }
 0x445   :  { %653 = vrot.lane.b32.xlu2 %v401_v55, %s1060_s0  ;;  %v842_v55 = vld [vmem:[%s1388_s6 + $0x30] sm:$0xff] }
 0x44c   :  { %v404_v47 = vpop.f32.mrf.mxu2 }
 0x44d   :  { %655 = vrot.lane.b32.xlu2 %v404_v47, %s1060_s0 }
 0x44e   :  { %v526_v56 = vpop.f32.mrf.mxu1 }
 0x44f   :  { %663 = vrot.lane.b32.xlu0 %v526_v56, %s1059_s27 }
 0x45e   :  { %v645_v57 = vpop.f32.mrf.mxu2 }
 0x45f   :  { %669 = vrot.lane.b32.xlu1 %v645_v57, %s1061_s28  ;;  %v841_v57 = vld [vmem:[%s1388_s6 + $0x28] sm:$0xff] }
 0x466   :  { %v648_v52 = vpop.f32.mrf.mxu2 }
 0x467   :  { %671 = vrot.lane.b32.xlu1 %v648_v52, %s1061_s28 }
 0x491   :  { %v662_v63 = vpop.permute.xlu2 %661 }
 0x49f   :  { %v654_v1 = vpop.permute.xlu2 %653 }
 0x4a0   :  { %v675_v3 = vsel %vm169_vm15, %v279_v51, %v654_v1 }
 0x4a1   :  { %v677_v35 = vsel %vm201_vm1, %v675_v3, %v662_v63 }
 0x4a7   :  { %v656_v6 = vpop.permute.xlu2 %655 }
 0x4a8   :  { %v676_v8 = vsel %vm169_vm15, %v282_v54, %v656_v6  ;;  %v762_v6 = vperm.slane %v1153_v59, 2 }
 0x4c1   :  { %v664_v7 = vpop.permute.xlu0 %663 }
 0x4c2   :  { %v678_v9 = vsel %vm201_vm1, %v676_v8, %v664_v7 }
 0x4d1   :  { %v670_v4 = vpop.permute.xlu1 %669 }
 0x4d2   :  { %v680_v5 = vsel %vm679_vm8, %v677_v35, %v670_v4 }
 0x4d3   :  { %923 = vmatmul.msk.f32.vlgmr.msra.gmra.mxu0 %vm30_vm0, %v680_v5 }
 0x4d9   :  { %v672_v11 = vpop.permute.xlu1 %671 }
 0x4da   :  { %v681_v12 = vsel %vm679_vm8, %v678_v9, %v672_v11 }
 0x4db   :  { %924 = vmatmul.msk.f32.gmra.mxu0 %vm30_vm0, %v681_v12 }
 0x550   :  { %v710_v15 = vpop.f32.mrf.mxu0 }
 0x551   :  { %v711_v16 = vadd.f32 %v710_v15, %v686_v14 }
 0x553   :  { %v1304_v17 = vadd.f32 %v711_v16, %v1107_v0 }
 0x555   :  { %v718_v41 = vsel %vm30_vm0, %v1304_v17, 0.0 }
 0x556   :  { %719 = vadd.xlane.f32.xlu2 %v718_v41  ;;  %v797_v41 = vperm.slane %v1153_v59, 3 }
 0x558   :  { %v713_v19 = vpop.f32.mrf.mxu0 }
 0x559   :  { %v714_v21 = vadd.f32 %v713_v19, %v686_v14 }
 0x55b   :  { %v1309_v13 = vadd.f32 %v714_v21, %v1114_v2 }
 0x55d   :  { %v721_v23 = vsel %vm30_vm0, %v1309_v13, 0.0 }
 0x55e   :  { %722 = vadd.xlane.f32.xlu1 %v721_v23 }
 0x5c9   :  { %v720_v24 = vpop.xlane.xlu2 %719 }
 0x5ca   :  { %v724_v25 = vmul.f32 %v720_v24, %v1118_v10 }
 0x5cc   :  { %v1315_v26 = vsub.f32 %v1304_v17, %v724_v25 }
 0x5ce   :  { %v728_v0 = vmul.f32 %v1315_v26, %v1315_v26  ;;  %v763_v14 = vmul.f32 %v762_v6, %v1315_v26 }
 0x5d0   :  { %v730_v27 = vsel %vm30_vm0, %v728_v0, 0.0 }
 0x5d1   :  { %731 = vadd.xlane.f32.xlu0 %v730_v27  ;;  %v723_v20 = vpop.xlane.xlu1 %722 }
 0x5d2   :  { %v725_v2 = vmul.f32 %v723_v20, %v1118_v10  ;;  %v801_v10 = vld [vmem:[%s1387_s5 + $0x8] sm:$0xff] }
 0x5d3   :  { %825 = vmatpush.msra.mxu1 %v801_v10  ;;  %v838_v10 = vld [vmem:[%s1388_s6 + $0x10] sm:$0xff] }
 0x5d4   :  { %v1322_v28 = vsub.f32 %v1309_v13, %v725_v2 }
 0x5d5   :  { %826 = vmatpush.msra.mxu1 %v800_v33  ;;  %v1019_v33 = vld [vmem:[%s1384_s2] sm:$0xff] }
 0x5d6   :  { %v729_v30 = vmul.f32 %v1322_v28, %v1322_v28 }
 0x5d8   :  { %v733_v31 = vsel %vm30_vm0, %v729_v30, 0.0  ;;  %v764_v30 = vmul.f32 %v762_v6, %v1322_v28  ;;  %v836_v28 = vld [vmem:[%s1388_s6] sm:$0xff] }
 0x5d9   :  { %734 = vadd.xlane.f32.xlu2 %v733_v31 }
 0x644   :  { %v732_v18 = vpop.xlane.xlu0 %731 }
 0x645   :  { %v736_v36 = vmul.f32 %v732_v18, %v1140_v29  ;;  %v837_v18 = vld [vmem:[%s1388_s6 + $0x8] sm:$0xff] }
 0x647   :  { %1011 = vrsqrt.f32 %v736_v36  ;;  %vm745_vm15 = vcmp.eq.f32.partialorder %v736_v36, inf  ;;  %v748_v49 = vand.u32 2147483648, %v736_v36  ;;  %vm747_vm1 = vcmp.eq.f32.partialorder %v736_v36, 0.0 }
 0x64c   :  { %v735_v37 = vpop.xlane.xlu2 %734 }
 0x64d   :  { %v1012_v22 = vpop.eup %1011  ;;  %v737_v38 = vmul.f32 %v735_v37, %v1140_v29  ;;  %v843_v29 = vld [vmem:[%s1388_s6 + $0x38] sm:$0xff]  ;;  %s1062_s6 = smov [#allocation2]  }
 0x64e   :  { %v739_v39 = vmul.f32 %v1012_v22, %v736_v36  ;;  %860 = vmatpush.msra.mxu3 %v843_v29  ;;  %s883_s12 = sshll.u32 %s1062_s6, 4  ;;  %s884_s12 = int_to_ptr.vmem [resolvable:$true] %s883_s12 }
 0x64f   :  { %1013 = vrsqrt.f32 %v737_v38  ;;  %vm757_vm9 = vcmp.eq.f32.partialorder %v737_v38, inf  ;;  %v760_v61 = vand.u32 2147483648, %v737_v38  ;;  %vm759_vm10 = vcmp.eq.f32.partialorder %v737_v38, 0.0 }
 0x650   :  { %v740_v40 = vmul.f32 %v1012_v22, %v739_v39  ;;  %861 = vmatpush.msra.mxu3 %v842_v55 }
 0x652   :  { %v741_v42 = vmul.f32 0.5, %v740_v40  ;;  %862 = vmatpush.msra.mxu3 %v841_v57 }
 0x654   :  { %v742_v50 = vsub.f32 1.5, %v741_v42  ;;  %863 = vmatpush.msra.mxu3 %v840_v58 }
 0x655   :  { %v1014_v43 = vpop.eup %1013 }
 0x656   :  { %v743_v44 = vmul.f32 %v1012_v22, %v742_v50  ;;  %v751_v45 = vmul.f32 %v1014_v43, %v737_v38  ;;  %864 = vmatpush.msra.mxu3 %v839_v62  ;;  %v844_v50 = vperm.slane %v1019_v33, 7 }
 0x658   :  { %v744_v46 = vmul.f32 %v743_v44, %v736_v36  ;;  %v752_v48 = vmul.f32 %v1014_v43, %v751_v45  ;;  %865 = vmatpush.msra.mxu3 %v838_v10 }
 0x65a   :  { %v746_v51 = vsel %vm745_vm15, %v736_v36, %v744_v46  ;;  %v753_v53 = vmul.f32 0.5, %v752_v48  ;;  %866 = vmatpush.msra.mxu3 %v837_v18  ;;  %v804_v36 = vperm.slane %v1019_v33, 6 }
 0x65b   :  { %v749_v54 = vsel %vm747_vm1, %v748_v49, %v746_v51 }
 0x65c   :  { %v765_v47 = vadd.f32 1e-06, %v749_v54  ;;  %v754_v56 = vsub.f32 1.5, %v753_v53  ;;  %867 = vmatpush.msra.mxu3 %v836_v28 }
 0x65e   :  { %1015 = vrcp.f32 %v765_v47  ;;  %v755_v52 = vmul.f32 %v1014_v43, %v754_v56  ;;  %v778_v7 = vand.u32 2147483648, %v765_v47  ;;  %v776_v9 = vand.u32 2147483647, %v765_v47 }
 0x65f   :  { %vm772_vm12 = vweird.f32 %v765_v47 }
 0x660   :  { %v756_v60 = vmul.f32 %v755_v52, %v737_v38  ;;  %v779_v15 = vor.u32 1.1754944e-38, %v778_v7  ;;  %vm777_vm14 = vcmp.eq.f32.partialorder %v776_v9, 8.507059e+37 }
 0x662   :  { %v758_v63 = vsel %vm757_vm9, %v737_v38, %v756_v60 }
 0x663   :  { %v761_v1 = vsel %vm759_vm10, %v760_v61, %v758_v63 }
 0x664   :  { %v1016_v3 = vpop.eup %1015  ;;  %v766_v35 = vadd.f32 1e-06, %v761_v1 }
 0x665   :  { %v768_v4 = vmul.f32 %v1016_v3, %v765_v47  ;;  %vm773_vm11 = vweird.f32 %v1016_v3 }
 0x666   :  { %1017 = vrcp.f32 %v766_v35  ;;  %vm774_vm13 = vmor %vm772_vm12, %vm773_vm11  ;;  %v793_v25 = vand.u32 2147483648, %v766_v35  ;;  %v791_v20 = vand.u32 2147483647, %v766_v35  ;;  %vm787_vm3 = vweird.f32 %v766_v35 }
 0x667   :  { %v769_v5 = vsub.f32 1.0, %v768_v4 }
 0x668   :  { %v794_v26 = vor.u32 1.1754944e-38, %v793_v25  ;;  %vm792_vm5 = vcmp.eq.f32.partialorder %v791_v20, 8.507059e+37 }
 0x669   :  { %v770_v8 = vmul.f32 %v1016_v3, %v769_v5 }
 0x66b   :  { %v771_v11 = vadd.f32 %v1016_v3, %v770_v8 }
 0x66c   :  { %v1018_v12 = vpop.eup %1017 }
 0x66d   :  { %v775_v16 = vsel %vm774_vm13, %v1016_v3, %v771_v11  ;;  %v783_v19 = vmul.f32 %v1018_v12, %v766_v35  ;;  %vm788_vm2 = vweird.f32 %v1018_v12 }
 0x66e   :  { %v780_v21 = vsel %vm777_vm14, %v779_v15, %v775_v16  ;;  %vm789_vm4 = vmor %vm787_vm3, %vm788_vm2 }
 0x66f   :  { %v781_v23 = vmul.f32 %v780_v21, %v763_v14  ;;  %v784_v24 = vsub.f32 1.0, %v783_v19 }
 0x671   :  { %v798_v0 = vadd.f32 %v797_v41, %v781_v23  ;;  %v785_v27 = vmul.f32 %v1018_v12, %v784_v24 }
 0x673   :  { %925 = vmatmul.msk.f32.vlgmr.msra.gmra.mxu1 %vm30_vm0, %v798_v0  ;;  %v786_v2 = vadd.f32 %v1018_v12, %v785_v27 }
 0x675   :  { %v790_v31 = vsel %vm789_vm4, %v1018_v12, %v786_v2 }
 0x676   :  { %v795_v59 = vsel %vm792_vm5, %v794_v26, %v790_v31 }
 0x677   :  { %v796_v34 = vmul.f32 %v795_v59, %v764_v30 }
 0x679   :  { %v799_v32 = vadd.f32 %v797_v41, %v796_v34 }
 0x67b   :  { %926 = vmatmul.msk.f32.gmra.mxu1 %vm30_vm0, %v799_v32 }
 0x6f0   :  { %v828_v37 = vpop.f32.mrf.mxu1 }
 0x6f1   :  { %v829_v22 = vadd.f32 %v828_v37, %v804_v36 }
 0x6f3   :  { %v834_v38 = vmax.f32 %v829_v22, 0.0 }
 0x6f5   :  { %927 = vmatmul.msk.f32.vlgmr.msra.gmra.mxu3 %vm845_vm6, %v834_v38 }
 0x6f8   :  { %v831_v39 = vpop.f32.mrf.mxu1 }
 0x6f9   :  { %v832_v40 = vadd.f32 %v831_v39, %v804_v36 }
 0x6fb   :  { %v835_v42 = vmax.f32 %v832_v40, 0.0 }
 0x6fd   :  { %928 = vmatmul.msk.f32.gmra.mxu3 %vm845_vm6, %v835_v42 }
 0x778   :  { %v869_v43 = vpop.f32.mrf.mxu3 }
 0x779   :  { %v870_v44 = vadd.f32 %v869_v43, %v844_v50 }
 0x77b   :  { %v875_v45 = vadd.f32 %v870_v44, %v1304_v17 }
 0x77d   :  { %877 = vst.msk [vmem:[#allocation2] sm:$0xff] %vm30_vm0, %v875_v45 }
 0x780   :  { %v872_v46 = vpop.f32.mrf.mxu3 }
 0x781   :  { %v873_v48 = vadd.f32 %v872_v46, %v844_v50 }
 0x783   :  { %v876_v49 = vadd.f32 %v873_v48, %v1309_v13 }
 0x785   :  { %878 = vst.msk [vmem:[#allocation2 + $0x8] sm:$0xff] %vm30_vm0, %v876_v49 }
 0x786   :  { %891 = dma.vmem_to_hbm [thread:$0]  %s884_s12, 256, %s886_s13, [#allocation3], %s1063_s14, %s1063_s14, %s1060_s0  }
 0x787   :  { %1044 = dma.done.wait [#allocation3], 256  }
 0x788   :  { %1045 = vsyncadd [#allocation3], 4294967040 }
 0x789   :  { %896 = vsyncpa [#allocation3], 1 }

</bundles_post_ra>
